<compile_context>
chip_gen: v5e
topology: v5e:2x2
jax: 0.10.0
libtpu: 0.0.40
codegen_flags: <defaults>
</compile_context>

<pallas_src>
import functools

import jax
import jax.numpy as jnp
from jax.experimental import pallas as pl
from jax.experimental.pallas import tpu as pltpu

VMEM_LIMIT_BYTES = 32 * 1024 * 1024


# ----------------------------------------------------------------------------
# Helpers
# ----------------------------------------------------------------------------
def _round_up(x, m):
    return ((x + m - 1) // m) * m


def _pick_tile(dim, target, granule):
    """Largest multiple of `granule` <= target that divides dim, else dim."""
    if dim <= target:
        return dim
    t = (target // granule) * granule
    while t >= granule:
        if dim % t == 0:
            return t
        t -= granule
    return dim


# ----------------------------------------------------------------------------
# Kernel 1: fused LayerNorm -> Linear (+ optional exact GELU)
#   used for: attn_ln -> fused QKV projection, mlp_ln -> MLP1
#   LN is computed once per row-tile (j==0) into a bf16 VMEM scratch and
#   reused across all output-column tiles.
# ----------------------------------------------------------------------------
def _ln_linear_kernel(x_ref, g_ref, b_ref, w_ref, bias_ref, o_ref, xn_ref, *,
                      eps, apply_gelu):
    @pl.when(pl.program_id(1) == 0)
    def _():
        x = x_ref[...].astype(jnp.float32)                    # (tm, C)
        mean = jnp.mean(x, axis=-1, keepdims=True)
        xc = x - mean
        var = jnp.mean(xc * xc, axis=-1, keepdims=True)
        xn = xc * jax.lax.rsqrt(var + eps)
        xn = xn * g_ref[...].astype(jnp.float32) + b_ref[...].astype(jnp.float32)
        xn_ref[...] = xn.astype(xn_ref.dtype)                 # bf16 scratch

    y = jnp.dot(xn_ref[...], w_ref[...],
                preferred_element_type=jnp.float32)           # (tm, tn)
    y = y + bias_ref[...].astype(jnp.float32)
    if apply_gelu:
        y = jax.nn.gelu(y, approximate=False)                 # erf GELU (torch)
    o_ref[...] = y.astype(o_ref.dtype)


def ln_linear(x, gamma, beta, w, b, *, apply_gelu, eps=1e-5):
    """LayerNorm(x) @ w + b (optionally GELU).  x:(M,C) f32, w:(C,N) bf16 -> (M,N) bf16."""
    M, C = x.shape
    N = w.shape[1]
    tm = _pick_tile(M, 256, 8)
    tn = _pick_tile(N, 512, 128)
    kernel = functools.partial(_ln_linear_kernel, eps=eps, apply_gelu=apply_gelu)
    return pl.pallas_call(
        kernel,
        out_shape=jax.ShapeDtypeStruct((M, N), jnp.bfloat16),
        grid=(M // tm, N // tn),
        in_specs=[
            pl.BlockSpec((tm, C), lambda i, j: (i, 0)),
            pl.BlockSpec((1, C), lambda i, j: (0, 0)),
            pl.BlockSpec((1, C), lambda i, j: (0, 0)),
            pl.BlockSpec((C, tn), lambda i, j: (0, j)),
            pl.BlockSpec((1, tn), lambda i, j: (0, j)),
        ],
        out_specs=pl.BlockSpec((tm, tn), lambda i, j: (i, j)),
        scratch_shapes=[pltpu.VMEM((tm, C), jnp.bfloat16)],   # cached LN(x)
        compiler_params=pltpu.CompilerParams(
            dimension_semantics=("parallel", "arbitrary"),
            vmem_limit_bytes=VMEM_LIMIT_BYTES),
    )(x, gamma.reshape(1, C), beta.reshape(1, C), w, b.reshape(1, N))


# ----------------------------------------------------------------------------
# Kernel 2: tiled Linear + bias + residual (K-accumulator pattern)
#   used for: attention out-projection, MLP2
#   Accumulator is initialized with bias + residual at k==0 (no epilogue add).
# ----------------------------------------------------------------------------
def _linear_residual_kernel(x_ref, w_ref, bias_ref, res_ref, o_ref, acc_ref):
    @pl.when(pl.program_id(2) == 0)
    def _():
        acc_ref[...] = (res_ref[...].astype(jnp.float32)
                        + bias_ref[...].astype(jnp.float32))

    acc_ref[...] += jnp.dot(x_ref[...], w_ref[...],
                            preferred_element_type=jnp.float32)

    @pl.when(pl.program_id(2) == pl.num_programs(2) - 1)
    def _():
        o_ref[...] = acc_ref[...].astype(o_ref.dtype)


def linear_residual(x, w, b, residual):
    """residual + x @ w + b.  x:(M,K) bf16, w:(K,N) bf16, residual:(M,N) f32."""
    M, K = x.shape
    N = w.shape[1]
    tm = _pick_tile(M, 256, 8)
    tn = _pick_tile(N, 512, 128)
    # Large K tile: the out-projection (K = C <= 1280) collapses to one k step.
    tk = _pick_tile(K, 2048, 128)
    return pl.pallas_call(
        _linear_residual_kernel,
        out_shape=jax.ShapeDtypeStruct((M, N), residual.dtype),
        grid=(M // tm, N // tn, K // tk),
        in_specs=[
            pl.BlockSpec((tm, tk), lambda i, j, k: (i, k)),
            pl.BlockSpec((tk, tn), lambda i, j, k: (k, j)),
            pl.BlockSpec((1, tn), lambda i, j, k: (0, j)),
            pl.BlockSpec((tm, tn), lambda i, j, k: (i, j)),
        ],
        out_specs=pl.BlockSpec((tm, tn), lambda i, j, k: (i, j)),
        scratch_shapes=[pltpu.VMEM((tm, tn), jnp.float32)],
        compiler_params=pltpu.CompilerParams(
            dimension_semantics=("parallel", "parallel", "arbitrary"),
            vmem_limit_bytes=VMEM_LIMIT_BYTES),
    )(x, w, b.reshape(1, N), residual)


# ----------------------------------------------------------------------------
# Kernel 3: flash-style multi-head self-attention over the fused QKV tensor.
#   Grid: (batch, head-group, q-tile, kv-tile); heads arrive via BlockSpec
#   index maps on the fused (B, T, 3C) tensor (Q is pre-scaled in the weights).
# ----------------------------------------------------------------------------
def _flash_attn_kernel(q_ref, k_ref, v_ref, o_ref, m_sc, l_sc, acc_sc, *,
                       g, dh, seq_len, t_pad, tq, tkv):
    ki = pl.program_id(3)

    @pl.when(ki == 0)
    def _():
        m_sc[...] = jnp.full(m_sc.shape, -1e30, m_sc.dtype)
        l_sc[...] = jnp.zeros(l_sc.shape, l_sc.dtype)
        acc_sc[...] = jnp.zeros(acc_sc.shape, acc_sc.dtype)

    q = q_ref[0]                                               # (tq, g*dh) bf16
    k = k_ref[0]                                               # (tkv, g*dh) bf16
    v = v_ref[0]

    needs_mask = seq_len != t_pad                              # static
    if needs_mask:
        kv_pos = ki * tkv + jax.lax.broadcasted_iota(jnp.int32, (tq, tkv), 1)
        kv_valid = kv_pos < seq_len

    for h in range(g):                                         # g in {1, 2}
        if g == 1:
            qh, kh, vh = q, k, v
        else:
            sl = slice(h * dh, (h + 1) * dh)
            qh, kh, vh = q[:, sl], k[:, sl], v[:, sl]
        # contract last dims of both operands: no k transpose materialized
        s = jax.lax.dot_general(qh, kh, (((1,), (1,)), ((), ())),
                                preferred_element_type=jnp.float32)  # (tq, tkv)
        if needs_mask:
            s = jnp.where(kv_valid, s, -1e30)
        m_prev = m_sc[h]                                       # (tq, 1)
        m_new = jnp.maximum(m_prev, jnp.max(s, axis=-1, keepdims=True))
        alpha = jnp.exp(m_prev - m_new)
        p = jnp.exp(s - m_new)
        l_sc[h] = alpha * l_sc[h] + jnp.sum(p, axis=-1, keepdims=True)
        acc_sc[h] = alpha * acc_sc[h] + jnp.dot(
            p.astype(jnp.bfloat16), vh, preferred_element_type=jnp.float32)
        m_sc[h] = m_new

    @pl.when(ki == pl.num_programs(3) - 1)
    def _():
        outs = [acc_sc[h] * pl.reciprocal(l_sc[h], approx=True) for h in range(g)]
        out = outs[0] if g == 1 else jnp.concatenate(outs, axis=-1)
        o_ref[0] = out.astype(o_ref.dtype)                     # lane-dense store


def flash_attention(qkv, n_head, seq_len):
    """qkv: (B, T_pad, 3C) bf16 fused [Q|K|V] (Q pre-scaled) -> (B, T_pad, C) bf16."""
    B, T_pad, C3 = qkv.shape
    C = C3 // 3
    dh = C // n_head
    # Group heads so each block is >=128 lanes wide (lane-aligned DMA).
    if dh % 128 == 0:
        g = 1
    elif 128 % dh == 0 and n_head % (128 // dh) == 0:
        g = 128 // dh
    else:
        g = 1  # TODO(synk): sub-128-lane head blocks for exotic head dims
    gl = g * dh
    HG = n_head // g
    tq = _pick_tile(T_pad, 256, 8)
    tkv = _pick_tile(T_pad, 512, 8)
    kernel = functools.partial(_flash_attn_kernel, g=g, dh=dh,
                               seq_len=seq_len, t_pad=T_pad, tq=tq, tkv=tkv)
    return pl.pallas_call(
        kernel,
        out_shape=jax.ShapeDtypeStruct((B, T_pad, C), qkv.dtype),
        grid=(B, HG, T_pad // tq, T_pad // tkv),
        in_specs=[
            pl.BlockSpec((1, tq, gl), lambda b, hg, qi, ki: (b, qi, hg)),
            pl.BlockSpec((1, tkv, gl), lambda b, hg, qi, ki: (b, ki, HG + hg)),
            pl.BlockSpec((1, tkv, gl), lambda b, hg, qi, ki: (b, ki, 2 * HG + hg)),
        ],
        out_specs=pl.BlockSpec((1, tq, gl), lambda b, hg, qi, ki: (b, qi, hg)),
        scratch_shapes=[
            pltpu.VMEM((g, tq, 1), jnp.float32),     # running max m
            pltpu.VMEM((g, tq, 1), jnp.float32),     # running denom l
            pltpu.VMEM((g, tq, dh), jnp.float32),    # running numerator
        ],
        compiler_params=pltpu.CompilerParams(
            dimension_semantics=("parallel", "parallel", "parallel", "arbitrary"),
            vmem_limit_bytes=VMEM_LIMIT_BYTES),
    )(qkv, qkv, qkv)


# ----------------------------------------------------------------------------
# ResidualAttentionBlock forward (self-attention, eval mode, no mask/cache)
# ----------------------------------------------------------------------------
def residual_attention_block(params, x, n_head, eps=1e-5):
    B, T, C = x.shape
    T_pad = _round_up(T, 128) if T > 128 else _round_up(T, 8)
    if T_pad != T:
        x = jnp.pad(x, ((0, 0), (0, T_pad - T), (0, 0)))
    M = B * T_pad
    x2 = x.reshape(M, C)                                       # f32 residual stream

    # x = x + out_proj( attention( qkv_proj( attn_ln(x) ) ) )
    qkv = ln_linear(x2, params["attn_ln_g"], params["attn_ln_b"],
                    params["qkv_w"], params["qkv_b"],
                    apply_gelu=False, eps=eps)                 # (M, 3C) bf16
    attn = flash_attention(qkv.reshape(B, T_pad, 3 * C), n_head, seq_len=T)
    x2 = linear_residual(attn.reshape(M, C),
                         params["out_w"], params["out_b"], x2)

    # x = x + mlp2( GELU( mlp1( mlp_ln(x) ) ) )
    h = ln_linear(x2, params["mlp_ln_g"], params["mlp_ln_b"],
                  params["mlp1_w"], params["mlp1_b"],
                  apply_gelu=True, eps=eps)                    # (M, 4C) bf16
    x2 = linear_residual(h, params["mlp2_w"], params["mlp2_b"], x2)

    out = x2.reshape(B, T_pad, C)
    if T_pad != T:
        out = out[:, :T, :]
    return out


# ----------------------------------------------------------------------------
# Parameter prep: fuse QKV, fold attention scale into Q, pre-cast weights bf16
# ----------------------------------------------------------------------------
def prepare_params(raw, n_head):
    C = raw["q_w"].shape[0]
    dh = C // n_head
    scale = float(dh) ** -0.5
    qkv_w = jnp.concatenate([raw["q_w"] * scale, raw["k_w"], raw["v_w"]], axis=1)
    qkv_b = jnp.concatenate([raw["q_b"] * scale,
                             jnp.zeros((C,), jnp.float32),      # key has no bias
                             raw["v_b"]])
    bf = lambda a: a.astype(jnp.bfloat16)
    f32 = lambda a: a.astype(jnp.float32)
    return {
        "attn_ln_g": f32(raw["attn_ln_g"]), "attn_ln_b": f32(raw["attn_ln_b"]),
        "qkv_w": bf(qkv_w), "qkv_b": f32(qkv_b),
        "out_w": bf(raw["out_w"]), "out_b": f32(raw["out_b"]),
        "mlp_ln_g": f32(raw["mlp_ln_g"]), "mlp_ln_b": f32(raw["mlp_ln_b"]),
        "mlp1_w": bf(raw["mlp1_w"]), "mlp1_b": f32(raw["mlp1_b"]),
        "mlp2_w": bf(raw["mlp2_w"]), "mlp2_b": f32(raw["mlp2_b"]),
    }


# ----------------------------------------------------------------------------
# Pure-JAX f32 reference (mirrors the PyTorch module)
# ----------------------------------------------------------------------------
def reference_block(raw, x, n_head, eps=1e-5):
    def ln(t, g, b):
        mu = jnp.mean(t, axis=-1, keepdims=True)
        tc = t - mu
        var = jnp.mean(tc * tc, axis=-1, keepdims=True)
        return tc * jax.lax.rsqrt(var + eps) * g + b

    def attn(t):
        B, T, C = t.shape
        dh = C // n_head
        q = t @ raw["q_w"] + raw["q_b"]
        k = t @ raw["k_w"]
        v = t @ raw["v_w"] + raw["v_b"]
        scale = float(dh) ** (-0.25)
        q = q.reshape(B, T, n_head, dh).transpose(0, 2, 1, 3) * scale
        k = k.reshape(B, T, n_head, dh).transpose(0, 2, 3, 1) * scale
        v = v.reshape(B, T, n_head, dh).transpose(0, 2, 1, 3)
        w = jax.nn.softmax(q @ k, axis=-1)
        wv = (w @ v).transpose(0, 2, 1, 3).reshape(B, T, C)
        return wv @ raw["out_w"] + raw["out_b"]

    h = x + attn(ln(x, raw["attn_ln_g"], raw["attn_ln_b"]))
    m = ln(h, raw["mlp_ln_g"], raw["mlp_ln_b"])
    m = jax.nn.gelu(m @ raw["mlp1_w"] + raw["mlp1_b"], approximate=False)
    return h + m @ raw["mlp2_w"] + raw["mlp2_b"]


# ----------------------------------------------------------------------------
# Deterministic synthetic parameters (torch-like layout, f32)
# ----------------------------------------------------------------------------
def init_block_params(key, n_state, scale=0.02):
    keys = iter(jax.random.split(key, 16))

    def w(shape):
        return scale * jax.random.normal(next(keys), shape, jnp.float32)

    C = n_state
    n_mlp = 4 * C
    return {
        "attn_ln_g": jnp.ones((C,), jnp.float32),
        "attn_ln_b": jnp.zeros((C,), jnp.float32),
        "q_w": w((C, C)), "q_b": w((C,)),
        "k_w": w((C, C)),                                   # key: no bias
        "v_w": w((C, C)), "v_b": w((C,)),
        "out_w": w((C, C)), "out_b": w((C,)),
        "mlp_ln_g": jnp.ones((C,), jnp.float32),
        "mlp_ln_b": jnp.zeros((C,), jnp.float32),
        "mlp1_w": w((C, n_mlp)), "mlp1_b": w((n_mlp,)),
        "mlp2_w": w((n_mlp, C)), "mlp2_b": w((C,)),
    }


# ----------------------------------------------------------------------------
if __name__ == "__main__":
    # Small config (real Whisper: n_state in {384..1280}, head dim 64, T=1500).
    # T=20 deliberately exercises the sequence padding + KV masking path.
    B, T, n_state, n_head = 2, 20, 256, 2

    root = jax.random.PRNGKey(0)
    pkey, xkey = jax.random.split(root)
    raw = init_block_params(pkey, n_state)
    params = prepare_params(raw, n_head)
    x = jax.random.normal(xkey, (B, T, n_state), jnp.float32)

    out = residual_attention_block(params, x, n_head)
    jax.block_until_ready(out)
    assert out.shape == (B, T, n_state), out.shape

    ref = reference_block(raw, x, n_head)
    err = float(jnp.max(jnp.abs(out - ref)))
    assert err < 5e-2, f"max abs err vs reference: {err}"

    print("KERNEL_OK")
</pallas_src>

<mosaic_0001>
module attributes {stable_mosaic.version = 11 : i64} {
  func.func @_ln_linear_kernel(%arg0: i32, %arg1: i32, %arg2: memref<48x256xf32, #tpu.memory_space<vmem>>, %arg3: memref<1x256xf32, #tpu.memory_space<vmem>>, %arg4: memref<1x256xf32, #tpu.memory_space<vmem>>, %arg5: memref<256x384xbf16, #tpu.memory_space<vmem>>, %arg6: memref<1x384xf32, #tpu.memory_space<vmem>>, %arg7: memref<48x384xbf16, #tpu.memory_space<vmem>>, %arg8: memref<48x256xbf16, #tpu.memory_space<vmem>>) attributes {dimension_semantics = [#tpu.dimension_semantics<parallel>, #tpu.dimension_semantics<arbitrary>], iteration_bounds = array<i64: 1, 2>, scalar_prefetch = 0 : i64, scratch_operands = 1 : i64, tpu.core_type = #tpu.core_type<tc>, window_params = [{transform_indices = @transform_0, window_bounds = array<i64: 48, 256>}, {pipeline_mode = #tpu.pipeline_mode<synchronous>, transform_indices = @transform_1, window_bounds = array<i64: 1, 256>}, {pipeline_mode = #tpu.pipeline_mode<synchronous>, transform_indices = @transform_2, window_bounds = array<i64: 1, 256>}, {transform_indices = @transform_3, window_bounds = array<i64: 256, 384>}, {transform_indices = @transform_4, window_bounds = array<i64: 1, 384>}, {transform_indices = @transform_5, window_bounds = array<i64: 48, 384>}]} {
    %c0_i32 = arith.constant 0 : i32
    %0 = arith.cmpi eq, %arg1, %c0_i32 : i32
    %1 = arith.extui %0 : i1 to i32
    %c0_i32_0 = arith.constant 0 : i32
    %2 = arith.cmpi ne, %1, %c0_i32_0 : i32
    scf.if %2 {
      %c0_8 = arith.constant 0 : index
      %c0_9 = arith.constant 0 : index
      %11 = vector.load %arg2[%c0_8, %c0_9] : memref<48x256xf32, #tpu.memory_space<vmem>>, vector<48x256xf32>
      %cst_10 = arith.constant dense<0.000000e+00> : vector<48xf32>
      %12 = vector.multi_reduction <add>, %11, %cst_10 [1] : vector<48x256xf32> to vector<48xf32>
      %13 = vector.shape_cast %12 : vector<48xf32> to vector<48x1xf32>
      %cst_11 = arith.constant 2.560000e+02 : f32
      %14 = vector.broadcast %cst_11 : f32 to vector<48x1xf32>
      %15 = arith.divf %13, %14 : vector<48x1xf32>
      %16 = vector.broadcast %15 : vector<48x1xf32> to vector<48x256xf32>
      %17 = arith.subf %11, %16 : vector<48x256xf32>
      %18 = arith.mulf %17, %17 : vector<48x256xf32>
      %cst_12 = arith.constant dense<0.000000e+00> : vector<48xf32>
      %19 = vector.multi_reduction <add>, %18, %cst_12 [1] : vector<48x256xf32> to vector<48xf32>
      %20 = vector.shape_cast %19 : vector<48xf32> to vector<48x1xf32>
      %cst_13 = arith.constant 2.560000e+02 : f32
      %21 = vector.broadcast %cst_13 : f32 to vector<48x1xf32>
      %22 = arith.divf %20, %21 : vector<48x1xf32>
      %cst_14 = arith.constant 9.99999974E-6 : f32
      %23 = vector.broadcast %cst_14 : f32 to vector<48x1xf32>
      %24 = arith.addf %22, %23 : vector<48x1xf32>
      %25 = math.rsqrt %24 : vector<48x1xf32>
      %26 = vector.broadcast %25 : vector<48x1xf32> to vector<48x256xf32>
      %27 = arith.mulf %17, %26 : vector<48x256xf32>
      %c0_15 = arith.constant 0 : index
      %c0_16 = arith.constant 0 : index
      %28 = vector.load %arg3[%c0_15, %c0_16] : memref<1x256xf32, #tpu.memory_space<vmem>>, vector<1x256xf32>
      %29 = vector.broadcast %28 : vector<1x256xf32> to vector<48x256xf32>
      %30 = arith.mulf %27, %29 : vector<48x256xf32>
      %c0_17 = arith.constant 0 : index
      %c0_18 = arith.constant 0 : index
      %31 = vector.load %arg4[%c0_17, %c0_18] : memref<1x256xf32, #tpu.memory_space<vmem>>, vector<1x256xf32>
      %32 = vector.broadcast %31 : vector<1x256xf32> to vector<48x256xf32>
      %33 = arith.addf %30, %32 : vector<48x256xf32>
      %34 = arith.truncf %33 : vector<48x256xf32> to vector<48x256xbf16>
      %c0_19 = arith.constant 0 : index
      %c0_20 = arith.constant 0 : index
      %35 = vector.load %arg8[%c0_19, %c0_20] : memref<48x256xbf16, #tpu.memory_space<vmem>>, vector<48x256xbf16>
      tpu.vector_store %arg8[%c0_19, %c0_20], %34 {strides = array<i32>} : memref<48x256xbf16, #tpu.memory_space<vmem>>, vector<48x256xbf16>,
    } else {
    }
    %c0 = arith.constant 0 : index
    %c0_1 = arith.constant 0 : index
    %3 = vector.load %arg8[%c0, %c0_1] : memref<48x256xbf16, #tpu.memory_space<vmem>>, vector<48x256xbf16>
    %c0_2 = arith.constant 0 : index
    %c0_3 = arith.constant 0 : index
    %4 = vector.load %arg5[%c0_2, %c0_3] : memref<256x384xbf16, #tpu.memory_space<vmem>>, vector<256x384xbf16>
    %cst = arith.constant dense<0.000000e+00> : vector<48x384xf32>
    %5 = tpu.matmul %3, %4, %cst {dimension_numbers = #tpu.dot_dimension_numbers<[1], [0], [0], [1], [0, 0, 1, 1], [], []>} : vector<48x256xbf16>, vector<256x384xbf16>, vector<48x384xf32> -> vector<48x384xf32>
    %c0_4 = arith.constant 0 : index
    %c0_5 = arith.constant 0 : index
    %6 = vector.load %arg6[%c0_4, %c0_5] : memref<1x384xf32, #tpu.memory_space<vmem>>, vector<1x384xf32>
    %7 = vector.broadcast %6 : vector<1x384xf32> to vector<48x384xf32>
    %8 = arith.addf %5, %7 : vector<48x384xf32>
    %9 = arith.truncf %8 : vector<48x384xf32> to vector<48x384xbf16>
    %c0_6 = arith.constant 0 : index
    %c0_7 = arith.constant 0 : index
    %10 = vector.load %arg7[%c0_6, %c0_7] : memref<48x384xbf16, #tpu.memory_space<vmem>>, vector<48x384xbf16>
    tpu.vector_store %arg7[%c0_6, %c0_7], %9 {strides = array<i32>} : memref<48x384xbf16, #tpu.memory_space<vmem>>, vector<48x384xbf16>,
    return
  }
  func.func @transform_0(%arg0: i32, %arg1: i32) -> (i32, i32) {
    %c0_i32 = arith.constant 0 : i32
    %c0_i32_0 = arith.constant 0 : i32
    return %arg0, %c0_i32 : i32, i32
  }
  func.func @transform_1(%arg0: i32, %arg1: i32) -> (i32, i32) {
    %c0_i32 = arith.constant 0 : i32
    %c0_i32_0 = arith.constant 0 : i32
    %c0_i32_1 = arith.constant 0 : i32
    return %c0_i32, %c0_i32_0 : i32, i32
  }
  func.func @transform_2(%arg0: i32, %arg1: i32) -> (i32, i32) {
    %c0_i32 = arith.constant 0 : i32
    %c0_i32_0 = arith.constant 0 : i32
    %c0_i32_1 = arith.constant 0 : i32
    return %c0_i32, %c0_i32_0 : i32, i32
  }
  func.func @transform_3(%arg0: i32, %arg1: i32) -> (i32, i32) {
    %c0_i32 = arith.constant 0 : i32
    %c0_i32_0 = arith.constant 0 : i32
    return %c0_i32, %arg1 : i32, i32
  }
  func.func @transform_4(%arg0: i32, %arg1: i32) -> (i32, i32) {
    %c0_i32 = arith.constant 0 : i32
    %c0_i32_0 = arith.constant 0 : i32
    return %c0_i32, %arg1 : i32, i32
  }
  func.func @transform_5(%arg0: i32, %arg1: i32) -> (i32, i32) {
    %c0_i32 = arith.constant 0 : i32
    return %arg0, %arg1 : i32, i32
  }
}

</mosaic_0001>

<bundles_post_ra>
// kernel: tpu_custom_call.1
= control target key start
LH: loop header
LB: loop body
LE: loop exit
PB: predicated region body
PF: predicated region fallthrough
CT: control target
= control target key end

     0   :  { %s2481_s0 = inlined_call_operand.hbm [shape: f32[48,256], index: 0, kind: input, shape index: {}]   ;;  %s2482_s1 = inlined_call_operand.hbm [shape: f32[1,256], index: 1, kind: input, shape index: {}]   ;;  %s2483_s2 = inlined_call_operand.hbm [shape: f32[1,256], index: 2, kind: input, shape index: {}]   ;;  %s2484_s3 = inlined_call_operand.hbm [shape: bf16[256,768], index: 3, kind: input, shape index: {}]   ;;  %s2485_s4 = inlined_call_operand.hbm [shape: f32[1,768], index: 4, kind: input, shape index: {}]   ;;  %s2486_s5 = inlined_call_operand.hbm [shape: bf16[48,768], index: 5, kind: output, shape index: {}]  }
   0x1   :  { %2493 = sst [smem:[#allocation22_spill]] %s2481_s0 }
   0x2   :  { %2494 = sst [smem:[#allocation23_spill]] %s2482_s1 }
   0x3   :  { %2495 = sst [smem:[#allocation24_spill]] %s2484_s3 }
   0x4   :  { %10 = vsyncpa [#allocation4], 0 }
   0x5   :  { %11 = vsyncpa [#allocation7], 0 }
   0x6   :  { %12 = vsyncpa [#allocation10], 0 }
   0x7   :  { %14 = vsyncpa [#allocation10 + $0x1], 0 }
   0x8   :  { %15 = vsyncpa [#allocation5], 0 }
   0x9   :  { %17 = vsyncpa [#allocation5 + $0x1], 0  ;;  %s1978_s18 = smov 0   ;;  %s1980_s19 = smov 0  }
   0xa   :  { %s1982_s20 = smov 0   ;;  %s1984_s21 = smov 0  }
   0xb   :  { %s1986_s22 = smov 0   ;;  %s1988_s23 = smov 0  }
   0xc LB: > { %2496 = sst [smem:[#allocation17_spill]] %s1914_s18  ;;  %s2009_s24 = sadd.s32 4294967295, %s1934_s23   ;;  %s1934_s23 = sphi %s1988_s23, %s23_s23   ;;  %s1930_s22 = sphi %s1986_s22, %s2521_s22   ;;  %s1926_s21 = sphi %s1984_s21, %s2520_s21   ;;  %s1922_s20 = sphi %s1982_s20, %s2519_s20   ;;  %s1918_s19 = sphi %s1980_s19, %s2518_s19   ;;  %s1914_s18 = sphi %s1978_s18, %s2517_s18  }
   0xd   : > { %2497 = sst [smem:[#allocation18_spill]] %s1934_s23  ;;  %s1265_s25 = sadd.s32 4294967294, %s1934_s23  }
   0xe   : > { %s110_s26 = sadd.s32 1, %s1922_s20  ;;  %p117_p0 = scmp.ne.s32.totalorder %s1922_s20, %s1918_s19 }
   0xf   : > { %p118_p1 = scmp.eq.s32.totalorder %s1934_s23, 0  ;;  %p123_p2 = scmp.ne.s32.totalorder %s1918_s19, %s1914_s18 }
  0x10   : > { %p124_p3 = scmp.eq.s32.totalorder %s2009_s24, 0  ;;  %p175_p4 = scmp.eq.s32.totalorder %s2009_s24, 1 }
  0x11   : > { %p2020_p5 = por %p118_p1, %p117_p0  ;;  %p181_p6 = scmp.eq.s32.totalorder %s1265_s25, 1 }
  0x12   : > { %p2026_p7 = por %p124_p3, %p123_p2  ;;  %p2030_p8 = por %p175_p4, %p117_p0 }
  0x13   : > { %p2034_p9 = por %p181_p6, %p123_p2  ;;  %p1266_p10 = scmp.ge.s32.totalorder %s1934_s23, 1 }
  0x14   : > { %p188_p11 = scmp.lt.s32.totalorder %s1934_s23, 3  ;;  %s2503_s1 = sld [smem:[#allocation23_spill]] }
  0x15   : > { %s2501_s30 = scalar_select %p2034_p9, 1, 0 }
  0x16   : > { %p2043_p12 = pnand %p1266_p10, %p188_p11  ;;  %s1936_s10 = smov [#allocation6]  }
  0x17   : > { %2502 = sst [smem:[#allocation19_spill]] %s2501_s30  ;;  %s220_s11 = sshll.u32 %s1936_s10, 4  ;;  %s221_s11 = int_to_ptr.vmem [resolvable:$true] %s220_s11 }
  0x18   : > { %p1270_p13 = scmp.ge.s32.totalorder %s1934_s23, 2  ;;  %p1591_p0 = pneg %p2043_p12 }
  0x19   : > { %p1615_p1 = scmp.lt.s32.totalorder %s1934_s23, 2  ;;  %s32_s14 = sadd.s32 1, %s1930_s22 }
  0x1a   : > { %s218_s8 = sshll.u32 %s2503_s1, 4  ;;  %p2053_p2 = pnand %p1591_p0, %p124_p3  ;;  %s219_s8 = int_to_ptr.hbm [resolvable:$true] %s218_s8 }
  0x1b   : > { %p2059_p4 = pnand %p1615_p1, %p2020_p5  ;;  %p33_p6 = scmp.ge.s32.totalorder %s32_s14, 2 }
  0x1c   : > { %1597 = dma.hbm_to_vmem [thread:$0]  (!%p2053_p2), %s219_s8, 32, %s221_s11, [#allocation7]  }
  0x1d   : > { %s243_s15 = sand.u32 1, %s1934_s23   ;;  %s2523_s14 = smov (%p33_p6, %s32_s14), 0 }
  0x1e   : > { %2507 = sst [smem:[#allocation20_spill]] %s2523_s14  ;;  %s2492_s16 = sand.u32 1, %s1922_s20  }
  0x1f   : > { %s107_s17 = ssub.s32 %s1930_s22, %s2523_s14  ;;  %s1568_s25 = smul.u32 384, %s2492_s16 }
  0x20   : > { %p108_p10 = scmp.eq.s32.totalorder %s107_s17, 0  ;;  %s1496_s27 = smul.u32 12, %s1930_s22 }
  0x21   : > { %s2509_s3 = sld [smem:[#allocation24_spill]]  ;;  %s247_s30 = scalar_lea.vmem [#allocation9], %s1568_s25 }
  0x22   : > { %s2078_s6 = scalar_select %p108_p10, %s1922_s20, %s110_s26  }
  0x23   : > { %s255_s8 = sshll.u32 %s247_s30, 4  ;;  %s244_s23 = scalar_lea.sflag [#allocation10], %s243_s15  ;;  %s256_s8 = int_to_ptr.vmem [resolvable:$true] %s255_s8 }
  0x24   : > { %2508 = sst [smem:[#allocation21_spill]] %s2078_s6  ;;  %s1937_s18 = smov 384  }
  0x25   : > { %s1938_s14 = smov 192   ;;  %s1939_s16 = smov 12  }
  0x26   : > { %s2510_s0 = sld [smem:[#allocation22_spill]]  ;;  %s1940_s25 = smov [#allocation3]  }
  0x27   : > { %s252_s1 = scalar_lea.hbm %s2509_s3, %s1496_s27  ;;  %s205_s30 = sshll.u32 %s1940_s25, 4  ;;  %s206_s30 = int_to_ptr.vmem [resolvable:$true] %s205_s30 }
  0x28   : > { %s253_s11 = sshll.u32 %s252_s1, 4  ;;  %s1941_s1 = smov 256   ;;  %s254_s11 = int_to_ptr.hbm [resolvable:$true] %s253_s11 }
  0x29   : > { %1604 = dma.hbm_to_vmem [thread:$0]  (!%p2059_p4), %s254_s11, 6144, %s256_s8, %s244_s23, %s1937_s18, %s1938_s14, %s1939_s16  }
  0x2a   : > { %s1942_s27 = smov 16   ;;  %s230_s3 = sshll.u32 %s2483_s2, 4  ;;  %s231_s3 = int_to_ptr.hbm [resolvable:$true] %s230_s3 }
  0x2b   : > { %s1943_s18 = smov [#allocation8]   ;;  %s2511_s16 = sand.u32 1, %s1922_s20  }
  0x2c   : > { %s203_s7 = sshll.u32 %s2510_s0, 4  ;;  %s232_s14 = sshll.u32 %s1943_s18, 4  ;;  %s204_s7 = int_to_ptr.hbm [resolvable:$true] %s203_s7  ;;  %s233_s14 = int_to_ptr.vmem [resolvable:$true] %s232_s14 }
  0x2d   : > { %1594 = dma.hbm_to_vmem [thread:$0]  (!%p2053_p2), %s204_s7, 1536, %s206_s30, [#allocation4], %s1941_s1, %s1941_s1, %s1942_s27  }
  0x2e   : > { %s1569_s8 = smul.u32 3, %s2511_s16 }
  0x2f   : > { %1600 = dma.hbm_to_vmem [thread:$0]  (!%p2053_p2), %s231_s3, 32, %s233_s14, [#allocation7]  }
  0x30   : > { %s270_s11 = smul.u32 3, %s1930_s22  ;;  %s269_s26 = scalar_lea.vmem [#allocation11], %s1569_s8 }
  0x31   : > { %s277_s17 = sshll.u32 %s269_s26, 4  ;;  %286 = sbr.rel (%p2043_p12) target bundleno = 611 (0x263), region = 40  ;;  %s278_s17 = int_to_ptr.vmem [resolvable:$true] %s277_s17 }
  0x32   : > { %s273_s6 = scalar_lea.hbm %s2485_s4, %s270_s11 }
  0x33   : > { %s275_s7 = sshll.u32 %s273_s6, 4  ;;  %s276_s7 = int_to_ptr.hbm [resolvable:$true] %s275_s7 }
  0x34   : > { %1607 = dma.hbm_to_vmem [thread:$0]  (!%p2059_p4), %s276_s7, 48, %s278_s17, %s244_s23  }
  0x36   : > { %1897 = dma.done.wait (%p124_p3), [#allocation4], 1536  }
  0x37   : > { %1899 = vsyncadd (%p124_p3), [#allocation4], 4294965760 }
  0x38   : > { %1901 = dma.done.wait (%p124_p3), [#allocation7], 64  }
  0x39   : > { %1903 = vsyncadd (%p124_p3), [#allocation7], 4294967232  ;;  %s303_s0 = sand.u32 1, %s2009_s24   ;;  %s2115_s3 = sand.u32 1, %s1918_s19  }
  0x3a   : > { %s1570_s23 = smul.u32 384, %s2115_s3  ;;  %s304_s9 = scalar_lea.sflag [#allocation10], %s303_s0 }
  0x3c   : > { %s2118_s12 = scalar_lea.vmem [#allocation9], %s1570_s23 }
  0x3d   : > { %1905 = dma.done.wait (%p2026_p7), %s304_s9, 6192  }
  0x3e   : > { %1907 = vsyncadd (%p2026_p7), %s304_s9, 4294961104  ;;  %s1571_s13 = smul.u32 3, %s2115_s3  ;;  %p1276_p3 = scmp.ne.s32.totalorder %s1926_s21, 0 }
  0x3f   : > { %s1572_s6 = smul.u32 72, %s2115_s3 }
  0x40   : > { %s2126_s30 = scalar_lea.vmem [#allocation11], %s1571_s13  ;;  %358 = sbr.rel (%p1276_p3) target bundleno = 362 (0x16a), region = 64 }
  0x41   : > { %s2128_s1 = scalar_lea.vmem [#allocation12], %s1572_s6 }
  0x45   : > { %v2131_v0 = vld [vmem:[#allocation3 + $0x40] sm:$0xff]  ;;  %v2133_v1 = vld [vmem:[#allocation3 + $0x48] sm:$0xff]  ;;  %v369_v9 = vld [vmem:[#allocation3 + $0x50] sm:$0xff]  ;;  %v1944_v18 = vmov 256.0  }
  0x46   : > { %v363_v2 = vld [vmem:[#allocation3 + $0x20] sm:$0xff]  ;;  %v383_v3 = vadd.f32 %v2133_v1, %v2131_v0  ;;  %v364_v4 = vld [vmem:[#allocation3 + $0x28] sm:$0xff]  ;;  %v370_v10 = vld [vmem:[#allocation3 + $0x58] sm:$0xff]  ;;  %1680 = vrcp.f32 %v1944_v18 }
  0x47   : > { %v359_v5 = vld [vmem:[#allocation3] sm:$0xff]  ;;  %v360_v6 = vld [vmem:[#allocation3 + $0x8] sm:$0xff]  ;;  %v377_v7 = vadd.f32 %v364_v4, %v363_v2  ;;  %v365_v11 = vld [vmem:[#allocation3 + $0x30] sm:$0xff]  ;;  %v386_v15 = vadd.f32 %v370_v10, %v369_v9 }
  0x48   : > { %v371_v8 = vadd.f32 %v360_v6, %v359_v5  ;;  %384 = vadd.xlane.f32.xlu2 %v383_v3  ;;  %v366_v12 = vld [vmem:[#allocation3 + $0x38] sm:$0xff]  ;;  %v361_v13 = vld [vmem:[#allocation3 + $0x10] sm:$0xff] }
  0x49   : > { %378 = vadd.xlane.f32.xlu1 %v377_v7  ;;  %v362_v14 = vld [vmem:[#allocation3 + $0x18] sm:$0xff]  ;;  %v380_v16 = vadd.f32 %v366_v12, %v365_v11 }
  0x4a   : > { %372 = vadd.xlane.f32.xlu0 %v371_v8  ;;  %v374_v17 = vadd.f32 %v362_v14, %v361_v13 }
  0x4c   : > { %v1681_v19 = vpop.eup %1680 }
  0x4d   : > { %v390_v20 = vmul.f32 256.0, %v1681_v19  ;;  %vm394_vm0 = vweird.f32 %v1681_v19 }
  0x4f   : > { %v391_v21 = vsub.f32 1.0, %v390_v20 }
  0x50   : > { %387 = vadd.xlane.f32.xlu2 %v386_v15 }
  0x51   : > { %381 = vadd.xlane.f32.xlu1 %v380_v16  ;;  %v392_v22 = vmul.f32 %v1681_v19, %v391_v21 }
  0x52   : > { %375 = vadd.xlane.f32.xlu0 %v374_v17 }
  0x53   : > { %v393_v23 = vadd.f32 %v1681_v19, %v392_v22  ;;  %v528_v22 = vld [vmem:[#allocation6] sm:$0x3] }
  0x55   : > { %v2137_v24 = vsel %vm394_vm0, %v1681_v19, %v393_v23  ;;  %v546_v23 = vld [vmem:[#allocation8] sm:$0x3] }
  0xbb   : > { %v385_v25 = vpop.xlane.xlu2 %384 }
  0xbc   : > { %v379_v26 = vpop.xlane.xlu1 %378  ;;  %v400_v52 = vmul.f32 %v2137_v24, %v385_v25 }
  0xbd   : > { %v373_v27 = vpop.xlane.xlu0 %372  ;;  %v398_v28 = vmul.f32 %v2137_v24, %v379_v26 }
  0xbe   : > { %v396_v29 = vmul.f32 %v2137_v24, %v373_v27  ;;  %v2186_v62 = vsub.f32 %v2131_v0, %v400_v52  ;;  %v2189_v63 = vsub.f32 %v2133_v1, %v400_v52 }
  0xbf   : > { %v2141_v30 = vsub.f32 %v363_v2, %v398_v28  ;;  %v2143_v31 = vsub.f32 %v364_v4, %v398_v28  ;;  %v2209_v28 = vperm.slane %v528_v22, 0 }
  0xc0   : > { %v2145_v32 = vsub.f32 %v359_v5, %v396_v29  ;;  %v2147_v33 = vsub.f32 %v360_v6, %v396_v29  ;;  %v422_v2 = vmul.f32 %v2186_v62, %v2186_v62  ;;  %v423_v3 = vmul.f32 %v2189_v63, %v2189_v63 }
  0xc1   : > { %v418_v34 = vmul.f32 %v2141_v30, %v2141_v30  ;;  %v419_v35 = vmul.f32 %v2143_v31, %v2143_v31  ;;  %v2211_v29 = vperm.slane %v528_v22, 1 }
  0xc2   : > { %v414_v36 = vmul.f32 %v2145_v32, %v2145_v32  ;;  %v415_v37 = vmul.f32 %v2147_v33, %v2147_v33  ;;  %v438_v4 = vadd.f32 %v423_v3, %v422_v2 }
  0xc3   : > { %v388_v38 = vpop.xlane.xlu2 %387  ;;  %v432_v39 = vadd.f32 %v419_v35, %v418_v34  ;;  %v2213_v34 = vperm.slane %v546_v23, 0 }
  0xc4   : > { %v426_v40 = vadd.f32 %v415_v37, %v414_v36  ;;  %v401_v41 = vmul.f32 %v2137_v24, %v388_v38  ;;  %v382_v42 = vpop.xlane.xlu1 %381 }
  0xc5   : > { %v376_v43 = vpop.xlane.xlu0 %375  ;;  %v399_v44 = vmul.f32 %v2137_v24, %v382_v42  ;;  %433 = vadd.xlane.f32.xlu2 %v432_v39 }
  0xc6   : > { %v397_v45 = vmul.f32 %v2137_v24, %v376_v43  ;;  %427 = vadd.xlane.f32.xlu0 %v426_v40  ;;  %v2160_v46 = vsub.f32 %v369_v9, %v401_v41  ;;  %v2162_v47 = vsub.f32 %v370_v10, %v401_v41  ;;  %v2216_v40 = vperm.slane %v546_v23, 1 }
  0xc7   : > { %v2164_v48 = vsub.f32 %v365_v11, %v399_v44  ;;  %v2166_v49 = vsub.f32 %v366_v12, %v399_v44 }
  0xc8   : > { %v2168_v50 = vsub.f32 %v361_v13, %v397_v45  ;;  %v2170_v51 = vsub.f32 %v362_v14, %v397_v45  ;;  %v424_v53 = vmul.f32 %v2160_v46, %v2160_v46  ;;  %v425_v54 = vmul.f32 %v2162_v47, %v2162_v47 }
  0xc9   : > { %v420_v55 = vmul.f32 %v2164_v48, %v2164_v48  ;;  %v421_v56 = vmul.f32 %v2166_v49, %v2166_v49 }
  0xca   : > { %v416_v57 = vmul.f32 %v2168_v50, %v2168_v50  ;;  %v417_v58 = vmul.f32 %v2170_v51, %v2170_v51  ;;  %v441_v59 = vadd.f32 %v425_v54, %v424_v53 }
  0xcb   : > { %v435_v60 = vadd.f32 %v421_v56, %v420_v55 }
  0xcc   : > { %v429_v61 = vadd.f32 %v417_v58, %v416_v57 }
  0xcd   : > { %442 = vadd.xlane.f32.xlu2 %v441_v59 }
  0xce   : > { %436 = vadd.xlane.f32.xlu0 %v435_v60  ;;  %430 = vadd.xlane.f32.xlu1 %v429_v61 }
  0xd6   : > { %439 = vadd.xlane.f32.xlu1 %v438_v4 }
 0x138   : > { %v434_v5 = vpop.xlane.xlu2 %433 }
 0x139   : > { %v428_v6 = vpop.xlane.xlu0 %427  ;;  %v446_v7 = vmul.f32 %v434_v5, %v2137_v24 }
 0x13a   : > { %v444_v0 = vmul.f32 %v428_v6, %v2137_v24 }
 0x13b   : > { %v452_v8 = vadd.f32 1e-05, %v446_v7 }
 0x13c   : > { %v450_v1 = vadd.f32 1e-05, %v444_v0 }
 0x13d   : > { %1682 = vrsqrt.f32 %v452_v8  ;;  %vm482_vm1 = vweird.f32 %v452_v8 }
 0x13e   : > { %1684 = vrsqrt.f32 %v450_v1  ;;  %vm462_vm3 = vweird.f32 %v450_v1 }
 0x140   : > { %v443_v9 = vpop.xlane.xlu2 %442 }
 0x141   : > { %v437_v10 = vpop.xlane.xlu0 %436  ;;  %v449_v11 = vmul.f32 %v443_v9, %v2137_v24  ;;  %v431_v12 = vpop.xlane.xlu1 %430 }
 0x142   : > { %v447_v13 = vmul.f32 %v437_v10, %v2137_v24  ;;  %v445_v14 = vmul.f32 %v431_v12, %v2137_v24 }
 0x143   : > { %v1683_v15 = vpop.eup %1682  ;;  %v2200_v16 = vadd.f32 1e-05, %v449_v11 }
 0x144   : > { %v2202_v17 = vadd.f32 1e-05, %v447_v13  ;;  %v1685_v18 = vpop.eup %1684  ;;  %v477_v19 = vmul.f32 %v1683_v15, %v452_v8  ;;  %v2204_v20 = vadd.f32 1e-05, %v445_v14  ;;  %vm483_vm2 = vweird.f32 %v1683_v15 }
 0x145   : > { %v457_v21 = vmul.f32 %v1685_v18, %v450_v1  ;;  %1686 = vrsqrt.f32 %v2200_v16  ;;  %vm463_vm4 = vweird.f32 %v1685_v18  ;;  %vm512_vm5 = vweird.f32 %v2200_v16  ;;  %vm484_vm7 = vmor %vm482_vm1, %vm483_vm2 }
 0x146   : > { %v478_v25 = vmul.f32 %v1683_v15, %v477_v19  ;;  %1688 = vrsqrt.f32 %v2204_v20  ;;  %vm492_vm6 = vweird.f32 %v2202_v17  ;;  %vm464_vm9 = vmor %vm462_vm3, %vm463_vm4  ;;  %vm472_vm13 = vweird.f32 %v2204_v20 }
 0x147   : > { %v458_v26 = vmul.f32 %v1685_v18, %v457_v21  ;;  %1690 = vrsqrt.f32 %v2202_v17 }
 0x148   : > { %v479_v27 = vmul.f32 0.5, %v478_v25 }
 0x149   : > { %v459_v35 = vmul.f32 0.5, %v458_v26  ;;  %v440_v36 = vpop.xlane.xlu1 %439 }
 0x14a   : > { %v480_v37 = vsub.f32 1.5, %v479_v27  ;;  %v448_v38 = vmul.f32 %v440_v36, %v2137_v24 }
 0x14b   : > { %v1687_v39 = vpop.eup %1686  ;;  %v460_v41 = vsub.f32 1.5, %v459_v35 }
 0x14c   : > { %v1689_v42 = vpop.eup %1688  ;;  %v481_v43 = vmul.f32 %v1683_v15, %v480_v37  ;;  %v507_v44 = vmul.f32 %v1687_v39, %v2200_v16  ;;  %vm513_vm8 = vweird.f32 %v1687_v39  ;;  %v2222_v53 = vadd.f32 1e-05, %v448_v38 }
 0x14d   : > { %v1691_v45 = vpop.eup %1690  ;;  %v461_v52 = vmul.f32 %v1685_v18, %v460_v41  ;;  %v467_v24 = vmul.f32 %v1689_v42, %v2204_v20  ;;  %vm473_vm10 = vweird.f32 %v1689_v42  ;;  %vm514_vm12 = vmor %vm512_vm5, %vm513_vm8 }
 0x14e   : > { %v485_v54 = vsel %vm484_vm7, %v1683_v15, %v481_v43  ;;  %v508_v55 = vmul.f32 %v1687_v39, %v507_v44  ;;  %v487_v56 = vmul.f32 %v1691_v45, %v2202_v17  ;;  %1692 = vrsqrt.f32 %v2222_v53  ;;  %vm474_vm14 = vmor %vm472_vm13, %vm473_vm10 }
 0x14f   : > { %v520_v57 = vmul.f32 %v485_v54, %v2141_v30  ;;  %v521_v58 = vmul.f32 %v485_v54, %v2143_v31  ;;  %v465_v59 = vsel %vm464_vm9, %v1685_v18, %v461_v52  ;;  %v468_v60 = vmul.f32 %v1689_v42, %v467_v24 }
 0x150   : > { %v516_v61 = vmul.f32 %v465_v59, %v2145_v32  ;;  %v517_v2 = vmul.f32 %v465_v59, %v2147_v33  ;;  %v509_v3 = vmul.f32 0.5, %v508_v55  ;;  %v488_v4 = vmul.f32 %v1691_v45, %v487_v56 }
 0x151   : > { %v538_v5 = vmul.f32 %v2209_v28, %v520_v57  ;;  %v539_v6 = vmul.f32 %v2211_v29, %v521_v58  ;;  %v469_v7 = vmul.f32 0.5, %v468_v60  ;;  %vm493_vm11 = vweird.f32 %v1691_v45 }
 0x152   : > { %v534_v0 = vmul.f32 %v2209_v28, %v516_v61  ;;  %v535_v30 = vmul.f32 %v2211_v29, %v517_v2  ;;  %v510_v31 = vsub.f32 1.5, %v509_v3  ;;  %v489_v8 = vmul.f32 0.5, %v488_v4  ;;  %vm494_vm15 = vmor %vm492_vm6, %vm493_vm11 }
 0x153   : > { %v556_v1 = vadd.f32 %v2213_v34, %v538_v5  ;;  %v557_v32 = vadd.f32 %v2216_v40, %v539_v6  ;;  %v470_v33 = vsub.f32 1.5, %v469_v7  ;;  %vm502_vm1 = vweird.f32 %v2222_v53 }
 0x154   : > { %v552_v9 = vadd.f32 %v2213_v34, %v534_v0  ;;  %v553_v10 = vadd.f32 %v2216_v40, %v535_v30  ;;  %v511_v11 = vmul.f32 %v1687_v39, %v510_v31  ;;  %v490_v12 = vsub.f32 1.5, %v489_v8  ;;  %v1693_v21 = vpop.eup %1692 }
 0x155   : > { %v566_v13 = vpack.c.bf16 %v557_v32, %v556_v1  ;;  %v471_v14 = vmul.f32 %v1689_v42, %v470_v33  ;;  %v497_v27 = vmul.f32 %v1693_v21, %v2222_v53  ;;  %vm503_vm0 = vweird.f32 %v1693_v21 }
 0x156   : > { %v564_v15 = vpack.c.bf16 %v553_v10, %v552_v9  ;;  %v515_v18 = vsel %vm514_vm12, %v1687_v39, %v511_v11  ;;  %v491_v19 = vmul.f32 %v1691_v45, %v490_v12  ;;  %vm504_vm2 = vmor %vm502_vm1, %vm503_vm0 }
 0x157   : > { %572 = vst [vmem:[#allocation2 + $0x10] sm:$0xff] %v566_v13  ;;  %v526_v22 = vmul.f32 %v515_v18, %v2160_v46  ;;  %v527_v23 = vmul.f32 %v515_v18, %v2162_v47  ;;  %v475_v25 = vsel %vm474_vm14, %v1689_v42, %v471_v14  ;;  %v498_v38 = vmul.f32 %v1693_v21, %v497_v27 }
 0x158   : > { %570 = vst [vmem:[#allocation2] sm:$0xff] %v564_v15  ;;  %v518_v16 = vmul.f32 %v475_v25, %v2168_v50  ;;  %v519_v20 = vmul.f32 %v475_v25, %v2170_v51  ;;  %v495_v26 = vsel %vm494_vm15, %v1691_v45, %v491_v19 }
 0x159   : > { %v544_v35 = vmul.f32 %v2209_v28, %v526_v22  ;;  %v545_v36 = vmul.f32 %v2211_v29, %v527_v23  ;;  %v522_v46 = vmul.f32 %v495_v26, %v2164_v48  ;;  %v523_v47 = vmul.f32 %v495_v26, %v2166_v49 }
 0x15a   : > { %v536_v37 = vmul.f32 %v2209_v28, %v518_v16  ;;  %v537_v17 = vmul.f32 %v2211_v29, %v519_v20  ;;  %v499_v48 = vmul.f32 0.5, %v498_v38 }
 0x15b   : > { %v562_v50 = vadd.f32 %v2213_v34, %v544_v35  ;;  %v563_v51 = vadd.f32 %v2216_v40, %v545_v36  ;;  %v540_v39 = vmul.f32 %v2209_v28, %v522_v46  ;;  %v541_v41 = vmul.f32 %v2211_v29, %v523_v47 }
 0x15c   : > { %v554_v42 = vadd.f32 %v2213_v34, %v536_v37  ;;  %v555_v43 = vadd.f32 %v2216_v40, %v537_v17  ;;  %v500_v24 = vsub.f32 1.5, %v499_v48 }
 0x15d   : > { %v569_v44 = vpack.c.bf16 %v563_v51, %v562_v50  ;;  %v558_v49 = vadd.f32 %v2213_v34, %v540_v39  ;;  %v559_v45 = vadd.f32 %v2216_v40, %v541_v41 }
 0x15e   : > { %v565_v52 = vpack.c.bf16 %v555_v43, %v554_v42  ;;  %v501_v55 = vmul.f32 %v1693_v21, %v500_v24 }
 0x15f   : > { %575 = vst [vmem:[#allocation2 + $0x28] sm:$0xff] %v569_v44  ;;  %v567_v54 = vpack.c.bf16 %v559_v45, %v558_v49 }
 0x160   : > { %571 = vst [vmem:[#allocation2 + $0x8] sm:$0xff] %v565_v52  ;;  %v505_v56 = vsel %vm504_vm2, %v1693_v21, %v501_v55 }
 0x161   : > { %573 = vst [vmem:[#allocation2 + $0x18] sm:$0xff] %v567_v54  ;;  %v524_v57 = vmul.f32 %v505_v56, %v2186_v62  ;;  %v525_v58 = vmul.f32 %v505_v56, %v2189_v63 }
 0x163   : > { %v542_v59 = vmul.f32 %v2209_v28, %v524_v57  ;;  %v543_v60 = vmul.f32 %v2211_v29, %v525_v58 }
 0x165   : > { %v560_v61 = vadd.f32 %v2213_v34, %v542_v59  ;;  %v561_v2 = vadd.f32 %v2216_v40, %v543_v60 }
 0x167   : > { %v568_v3 = vpack.c.bf16 %v561_v2, %v560_v61 }
 0x169   : > { %574 = vst [vmem:[#allocation2 + $0x20] sm:$0xff] %v568_v3 }
 0x16a PF: > { %v1387_v62 = vld [vmem:[%s2118_s12 + $0xa8] sm:$0xf]  ;;  %v1525_v63 = vld [vmem:[%s2118_s12 + $0xb0] sm:$0xf0]  ;;  %v1375_v40 = vld [vmem:[%s2118_s12 + $0x90] sm:$0xf] }
 0x16b   : > { %v1483_v28 = vld [vmem:[%s2118_s12 + $0x168] sm:$0xf]  ;;  %v1388_v29 = vor.u32 %v1525_v63, %v1387_v62  ;;  %v1549_v34 = vld [vmem:[%s2118_s12 + $0x170] sm:$0xf0]  ;;  %v1522_v53 = vld [vmem:[%s2118_s12 + $0x98] sm:$0xf0] }
 0x16c   : > { %v1484_v4 = vor.u32 %v1549_v34, %v1483_v28  ;;  %v1471_v5 = vld [vmem:[%s2118_s12 + $0x150] sm:$0xf]  ;;  %v1546_v6 = vld [vmem:[%s2118_s12 + $0x158] sm:$0xf0]  ;;  %v1376_v7 = vor.u32 %v1522_v53, %v1375_v40  ;;  %v1363_v30 = vld [vmem:[%s2118_s12 + $0x78] sm:$0xf] }
 0x16d   : > { %940 = vmatpush.bf16.msra.mxu0 %v1388_v29  ;;  %1552 = vmatpush.bf16.msra.mxu2 %v1388_v29  ;;  %v1472_v0 = vor.u32 %v1546_v6, %v1471_v5  ;;  %v1519_v31 = vld [vmem:[%s2118_s12 + $0x80] sm:$0xf0]  ;;  %v1459_v8 = vld [vmem:[%s2118_s12 + $0x138] sm:$0xf]  ;;  %v1351_v9 = vld [vmem:[%s2118_s12 + $0x60] sm:$0xf] }
 0x16e   : > { %964 = vmatpush.bf16.msra.mxu1 %v1484_v4  ;;  %1560 = vmatpush.bf16.msra.mxu3 %v1484_v4  ;;  %v1543_v1 = vld [vmem:[%s2118_s12 + $0x140] sm:$0xf0]  ;;  %v1364_v32 = vor.u32 %v1519_v31, %v1363_v30  ;;  %v1516_v10 = vld [vmem:[%s2118_s12 + $0x68] sm:$0xf0]  ;;  %v1447_v11 = vld [vmem:[%s2118_s12 + $0x120] sm:$0xf] }
 0x16f   : > { %v1460_v33 = vor.u32 %v1543_v1, %v1459_v8  ;;  %v1540_v12 = vld [vmem:[%s2118_s12 + $0x128] sm:$0xf0]  ;;  %v1352_v13 = vor.u32 %v1516_v10, %v1351_v9  ;;  %v1339_v15 = vld [vmem:[%s2118_s12 + $0x48] sm:$0xf]  ;;  %v1513_v18 = vld [vmem:[%s2118_s12 + $0x50] sm:$0xf0] }
 0x170   : > { %v1448_v14 = vor.u32 %v1540_v12, %v1447_v11  ;;  %v1435_v19 = vld [vmem:[%s2118_s12 + $0x108] sm:$0xf]  ;;  %v1537_v21 = vld [vmem:[%s2118_s12 + $0x110] sm:$0xf0]  ;;  %v1340_v22 = vor.u32 %v1513_v18, %v1339_v15  ;;  %v1327_v25 = vld [vmem:[%s2118_s12 + $0x30] sm:$0xf] }
 0x171   : > { %941 = vmatpush.bf16.msra.mxu0 %v1376_v7  ;;  %1553 = vmatpush.bf16.msra.mxu2 %v1376_v7  ;;  %v1436_v23 = vor.u32 %v1537_v21, %v1435_v19  ;;  %v1510_v16 = vld [vmem:[%s2118_s12 + $0x38] sm:$0xf0]  ;;  %v1423_v20 = vld [vmem:[%s2118_s12 + $0xf0] sm:$0xf]  ;;  %v1315_v36 = vld [vmem:[%s2118_s12 + $0x18] sm:$0xf] }
 0x172   : > { %965 = vmatpush.bf16.msra.mxu1 %v1472_v0  ;;  %1561 = vmatpush.bf16.msra.mxu3 %v1472_v0  ;;  %v1534_v26 = vld [vmem:[%s2118_s12 + $0xf8] sm:$0xf0]  ;;  %v1328_v27 = vor.u32 %v1510_v16, %v1327_v25  ;;  %v1507_v46 = vld [vmem:[%s2118_s12 + $0x20] sm:$0xf0]  ;;  %v1411_v47 = vld [vmem:[%s2118_s12 + $0xd8] sm:$0xf] }
 0x173   : > { %v1424_v35 = vor.u32 %v1534_v26, %v1423_v20  ;;  %v1531_v37 = vld [vmem:[%s2118_s12 + $0xe0] sm:$0xf0]  ;;  %v1316_v17 = vor.u32 %v1507_v46, %v1315_v36  ;;  %v1303_v38 = vld [vmem:[%s2118_s12] sm:$0xf]  ;;  %v1504_v50 = vld [vmem:[%s2118_s12 + $0x8] sm:$0xf0] }
 0x174   : > { %v1399_v51 = vld [vmem:[%s2118_s12 + $0xc0] sm:$0xf]  ;;  %v1412_v39 = vor.u32 %v1531_v37, %v1411_v47  ;;  %v1528_v41 = vld [vmem:[%s2118_s12 + $0xc8] sm:$0xf0]  ;;  %v1389_v43 = vld [vmem:[%s2118_s12 + $0xb4] sm:$0xf0]  ;;  %v1304_v54 = vor.u32 %v1504_v50, %v1303_v38 }
 0x175   : > { %942 = vmatpush.bf16.msra.mxu0 %v1364_v32  ;;  %1554 = vmatpush.bf16.msra.mxu2 %v1364_v32  ;;  %v1524_v42 = vld [vmem:[%s2118_s12 + $0xac] sm:$0xf]  ;;  %v1485_v44 = vld [vmem:[%s2118_s12 + $0x174] sm:$0xf0]  ;;  %v1498_v45 = vld [vmem:[#allocation2 + $0x4] sm:$0xf0]  ;;  %v1400_v58 = vor.u32 %v1528_v41, %v1399_v51 }
 0x176   : > { %966 = vmatpush.bf16.msra.mxu1 %v1460_v33  ;;  %1562 = vmatpush.bf16.msra.mxu3 %v1460_v33  ;;  %v1548_v48 = vld [vmem:[%s2118_s12 + $0x16c] sm:$0xf]  ;;  %v1497_v52 = vld [vmem:[#allocation2 + $0x4] sm:$0xf]  ;;  %v1281_v24 = vld [vmem:[#allocation2 + $0x8] sm:$0xf0]  ;;  %v1392_v2 = vor.u32 %v1524_v42, %v1389_v43 }
 0x177   : > { %v1279_v49 = vld [vmem:[#allocation2] sm:$0xf]  ;;  %v1395_v55 = vld [vmem:[%s2118_s12 + $0xb0] sm:$0xf]  ;;  %v1550_v57 = vld [vmem:[%s2118_s12 + $0x178] sm:$0xf0]  ;;  %v1488_v3 = vor.u32 %v1548_v48, %v1485_v44  ;;  %v2318_v5 = vor.u32 %v1497_v52, %v1281_v24 }
 0x178   : > { %v1491_v56 = vld [vmem:[%s2118_s12 + $0x170] sm:$0xf]  ;;  %v1526_v59 = vld [vmem:[%s2118_s12 + $0xb8] sm:$0xf0]  ;;  %v1521_v60 = vld [vmem:[%s2118_s12 + $0x94] sm:$0xf]  ;;  %v2313_v29 = vor.u32 %v1498_v45, %v1279_v49 }
 0x179   : > { %943 = vmatpush.bf16.msra.mxu0 %v1352_v13  ;;  %1555 = vmatpush.bf16.msra.mxu2 %v1352_v13  ;;  %v1295_v61 = vld [vmem:[#allocation2 + $0x20] sm:$0xf]  ;;  %v1502_v62 = vld [vmem:[#allocation2 + $0x24] sm:$0xf0]  ;;  %v1501_v63 = vld [vmem:[#allocation2 + $0x24] sm:$0xf]  ;;  %v1492_v34 = vor.u32 %v1550_v57, %v1491_v56  ;;  %v1396_v6 = vor.u32 %v1526_v59, %v1395_v55 }
 0x17a   : > { %967 = vmatpush.bf16.msra.mxu1 %v1448_v14  ;;  %1563 = vmatpush.bf16.msra.mxu3 %v1448_v14  ;;  %v1297_v28 = vld [vmem:[#allocation2 + $0x28] sm:$0xf0]  ;;  %v1377_v40 = vld [vmem:[%s2118_s12 + $0x9c] sm:$0xf0]  ;;  %v1545_v53 = vld [vmem:[%s2118_s12 + $0x154] sm:$0xf]  ;;  %v2322_v30 = vor.u32 %v1502_v62, %v1295_v61 }
 0x17b   : > { %v1473_v4 = vld [vmem:[%s2118_s12 + $0x15c] sm:$0xf0]  ;;  %v1479_v7 = vld [vmem:[%s2118_s12 + $0x158] sm:$0xf]  ;;  %v1547_v0 = vld [vmem:[%s2118_s12 + $0x160] sm:$0xf0]  ;;  %v2326_v1 = vor.u32 %v1501_v63, %v1297_v28  ;;  %v1380_v32 = vor.u32 %v1521_v60, %v1377_v40 }
 0x17c   : > { %v1383_v31 = vld [vmem:[%s2118_s12 + $0x98] sm:$0xf]  ;;  %v1523_v8 = vld [vmem:[%s2118_s12 + $0xa0] sm:$0xf0]  ;;  %v1476_v33 = vor.u32 %v1545_v53, %v1473_v4  ;;  %v1518_v9 = vld [vmem:[%s2118_s12 + $0x7c] sm:$0xf]  ;;  %v1480_v10 = vor.u32 %v1547_v0, %v1479_v7 }
 0x17d   : > { %944 = vmatpush.bf16.msra.mxu0 %v1340_v22  ;;  %1556 = vmatpush.bf16.msra.mxu2 %v1340_v22  ;;  %v1365_v11 = vld [vmem:[%s2118_s12 + $0x84] sm:$0xf0]  ;;  %v1542_v12 = vld [vmem:[%s2118_s12 + $0x13c] sm:$0xf]  ;;  %v1384_v14 = vor.u32 %v1523_v8, %v1383_v31  ;;  %v1467_v15 = vld [vmem:[%s2118_s12 + $0x140] sm:$0xf] }
 0x17e   : > { %968 = vmatpush.bf16.msra.mxu1 %v1436_v23  ;;  %1564 = vmatpush.bf16.msra.mxu3 %v1436_v23  ;;  %v1461_v13 = vld [vmem:[%s2118_s12 + $0x144] sm:$0xf0]  ;;  %v1544_v18 = vld [vmem:[%s2118_s12 + $0x148] sm:$0xf0]  ;;  %v1371_v19 = vld [vmem:[%s2118_s12 + $0x80] sm:$0xf]  ;;  %v1368_v22 = vor.u32 %v1518_v9, %v1365_v11 }
 0x17f   : > { %v1520_v21 = vld [vmem:[%s2118_s12 + $0x88] sm:$0xf0]  ;;  %v1464_v23 = vor.u32 %v1542_v12, %v1461_v13  ;;  %v1515_v25 = vld [vmem:[%s2118_s12 + $0x64] sm:$0xf]  ;;  %v1468_v16 = vor.u32 %v1544_v18, %v1467_v15  ;;  %v1353_v20 = vld [vmem:[%s2118_s12 + $0x6c] sm:$0xf0] }
 0x180   : > { %v1539_v26 = vld [vmem:[%s2118_s12 + $0x124] sm:$0xf]  ;;  %v1455_v36 = vld [vmem:[%s2118_s12 + $0x128] sm:$0xf]  ;;  %v1541_v46 = vld [vmem:[%s2118_s12 + $0x130] sm:$0xf0] }
 0x181   : > { %945 = vmatpush.bf16.msra.mxu0 %v1328_v27  ;;  %1557 = vmatpush.bf16.msra.mxu2 %v1328_v27  ;;  %v1449_v27 = vld [vmem:[%s2118_s12 + $0x12c] sm:$0xf0]  ;;  %v1359_v47 = vld [vmem:[%s2118_s12 + $0x68] sm:$0xf]  ;;  %v1517_v37 = vld [vmem:[%s2118_s12 + $0x70] sm:$0xf0]  ;;  %v1456_v41 = vor.u32 %v1541_v46, %v1455_v36 }
 0x182   : > { %969 = vmatpush.bf16.msra.mxu1 %v1424_v35  ;;  %1565 = vmatpush.bf16.msra.mxu3 %v1424_v35  ;;  %v1372_v35 = vor.u32 %v1520_v21, %v1371_v19  ;;  %v1452_v38 = vor.u32 %v1539_v26, %v1449_v27  ;;  %v1512_v50 = vld [vmem:[%s2118_s12 + $0x4c] sm:$0xf]  ;;  %v1341_v51 = vld [vmem:[%s2118_s12 + $0x54] sm:$0xf0]  ;;  %v1287_v43 = vld [vmem:[#allocation2 + $0x10] sm:$0xf]  ;;  %v1360_v44 = vor.u32 %v1517_v37, %v1359_v47 }
 0x183   : > { %v1437_v42 = vld [vmem:[%s2118_s12 + $0x114] sm:$0xf0]  ;;  %v1500_v48 = vld [vmem:[#allocation2 + $0x14] sm:$0xf0]  ;;  %v1499_v49 = vld [vmem:[#allocation2 + $0x14] sm:$0xf]  ;;  %v1344_v56 = vor.u32 %v1512_v50, %v1341_v51 }
 0x184   : > { %v1443_v45 = vld [vmem:[%s2118_s12 + $0x110] sm:$0xf]  ;;  %v1538_v52 = vld [vmem:[%s2118_s12 + $0x118] sm:$0xf0]  ;;  %v1289_v24 = vld [vmem:[#allocation2 + $0x18] sm:$0xf0]  ;;  %v2357_v59 = vor.u32 %v1500_v48, %v1287_v43 }
 0x185   : > { %946 = vmatpush.bf16.msra.mxu0 %v1316_v17  ;;  %1558 = vmatpush.bf16.msra.mxu2 %v1316_v17  ;;  %v1356_v17 = vor.u32 %v1515_v25, %v1353_v20  ;;  %v1514_v55 = vld [vmem:[%s2118_s12 + $0x58] sm:$0xf0]  ;;  %v1444_v60 = vor.u32 %v1538_v52, %v1443_v45  ;;  %v1329_v61 = vld [vmem:[%s2118_s12 + $0x3c] sm:$0xf0]  ;;  %v1292_v62 = vor.u32 %v1499_v49, %v1289_v24  ;;  %v1431_v28 = vld [vmem:[%s2118_s12 + $0xf8] sm:$0xf] }
 0x186   : > { %970 = vmatpush.bf16.msra.mxu1 %v1412_v39  ;;  %1566 = vmatpush.bf16.msra.mxu3 %v1412_v39  ;;  %v1536_v39 = vld [vmem:[%s2118_s12 + $0x10c] sm:$0xf]  ;;  %v1335_v40 = vld [vmem:[%s2118_s12 + $0x38] sm:$0xf]  ;;  %v1511_v53 = vld [vmem:[%s2118_s12 + $0x40] sm:$0xf0] }
 0x187   : > { %v1440_v57 = vor.u32 %v1536_v39, %v1437_v42  ;;  %v1506_v7 = vld [vmem:[%s2118_s12 + $0x1c] sm:$0xf]  ;;  %v1317_v31 = vld [vmem:[%s2118_s12 + $0x24] sm:$0xf0]  ;;  %v1419_v9 = vld [vmem:[%s2118_s12 + $0xe0] sm:$0xf] }
 0x188   : > { %v1530_v8 = vld [vmem:[%s2118_s12 + $0xdc] sm:$0xf]  ;;  %v1323_v11 = vld [vmem:[%s2118_s12 + $0x20] sm:$0xf]  ;;  %v1508_v12 = vld [vmem:[%s2118_s12 + $0x28] sm:$0xf0]  ;;  %v1320_v13 = vor.u32 %v1506_v7, %v1317_v31 }
 0x189   : > { %947 = vmatpush.bf16.msra.mxu0 %v1304_v54  ;;  %1559 = vmatpush.bf16.msra.mxu2 %v1304_v54  ;;  %v1347_v54 = vld [vmem:[%s2118_s12 + $0x50] sm:$0xf]  ;;  %v1503_v15 = vld [vmem:[%s2118_s12 + $0x4] sm:$0xf]  ;;  %v1407_v25 = vld [vmem:[%s2118_s12 + $0xc8] sm:$0xf] }
 0x18a   : > { %971 = vmatpush.bf16.msra.mxu1 %v1400_v58  ;;  %1567 = vmatpush.bf16.msra.mxu3 %v1400_v58  ;;  %v1509_v58 = vld [vmem:[%s2118_s12 + $0x34] sm:$0xf]  ;;  %v1348_v63 = vor.u32 %v1514_v55, %v1347_v54  ;;  %v1305_v19 = vld [vmem:[%s2118_s12 + $0xc] sm:$0xf0]  ;;  %v1527_v21 = vld [vmem:[%s2118_s12 + $0xc4] sm:$0xf] }
 0x18b   : > { %v1332_v4 = vor.u32 %v1509_v58, %v1329_v61  ;;  %v1311_v20 = vld [vmem:[%s2118_s12 + $0x8] sm:$0xf]  ;;  %v1505_v26 = vld [vmem:[%s2118_s12 + $0x10] sm:$0xf0]  ;;  %v1308_v27 = vor.u32 %v1503_v15, %v1305_v19  ;;  %v646_v42 = vld [vmem:[%s2126_s30] sm:$0x7] }
 0x18c   : > { %948 = vmatmul.bf16.vlgmr.msra.gmra.mxu0 %v2313_v29  ;;  %958 = vmatmul.bf16.vlgmr.msra.gmra.mxu2 %v2322_v30  ;;  %v1312_v46 = vor.u32 %v1505_v26, %v1311_v20  ;;  %v2407_v52 = vperm.slane %v646_v42, 1  ;;  %s1551_s24 = smul.u32 12, %s1926_s21  ;;  %s1124_s21 = sshll.u32 %s2128_s1, 4  ;;  %s1125_s21 = int_to_ptr.vmem [resolvable:$true] %s1124_s21 }
 0x18d   : > { %988 = vmatpush.bf16.msrb.mxu2 %v1392_v2  ;;  %972 = vmatmul.bf16.vlgmr.msra.gmra.mxu1 %v2318_v5  ;;  %v1533_v2 = vld [vmem:[%s2118_s12 + $0xf4] sm:$0xf]  ;;  %s1109_s18 = scalar_lea.sflag [#allocation5], %s2115_s3  ;;  %s1864_s26 = scalar_lea.hbm %s2486_s5, 144 }
 0x18e   : > { %1012 = vmatpush.bf16.msrb.mxu3 %v1488_v3  ;;  %1060 = vmatpush.bf16.msrb.mxu1 %v1492_v34  ;;  %v1425_v3 = vld [vmem:[%s2118_s12 + $0xfc] sm:$0xf0]  ;;  %v1535_v34 = vld [vmem:[%s2118_s12 + $0x100] sm:$0xf0]  ;;  %s1123_s15 = scalar_lea.hbm %s2486_s5, %s1551_s24 }
 0x18f   : > { %1036 = vmatpush.bf16.msrb.mxu0 %v1396_v6  ;;  %982 = vmatmul.bf16.vlgmr.msra.gmra.mxu3 %v2326_v1  ;;  %v1428_v6 = vor.u32 %v1533_v2, %v1425_v3  ;;  %v1432_v0 = vor.u32 %v1535_v34, %v1431_v28  ;;  %s1126_s10 = sshll.u32 %s1123_s15, 4  ;;  %s1127_s10 = int_to_ptr.hbm [resolvable:$true] %s1126_s10 }
 0x190   : > { %s1858_s14 = sshra.s32 %s1127_s10, 4  ;;  %s1859_s14 = int_to_ptr.hbm [resolvable:$true] %s1858_s14 }
 0x191   : > { %989 = vmatpush.bf16.msrb.mxu2 %v1380_v32  ;;  %v1413_v32 = vld [vmem:[%s2118_s12 + $0xe4] sm:$0xf0]  ;;  %s1860_s16 = scalar_lea.hbm %s1859_s14, 72  ;;  %p1865_p12 = scmp.lt.s32.totalorder %s1859_s14, %s2486_s5 }
 0x192   : > { %1013 = vmatpush.bf16.msrb.mxu3 %v1476_v33  ;;  %1061 = vmatpush.bf16.msrb.mxu1 %v1480_v10  ;;  %v1336_v33 = vor.u32 %v1511_v53, %v1335_v40  ;;  %v1532_v10 = vld [vmem:[%s2118_s12 + $0xe8] sm:$0xf0]  ;;  %p1861_p5 = scmp.ne.s32.totalorder %s1859_s14, %s1860_s16  ;;  %p1866_p0 = scmp.lt.s32.totalorder %s1864_s26, %s1860_s16 }
 0x193   : > { %1037 = vmatpush.bf16.msrb.mxu0 %v1384_v14  ;;  %v1416_v14 = vor.u32 %v1530_v8, %v1413_v32  ;;  %v1420_v18 = vor.u32 %v1532_v10, %v1419_v9 }
 0x194   : > { %p1862_p7 = pnand %p1861_p5, %p2030_p8  ;;  %p1867_p1 = por %p1866_p0, %p1865_p12 }
 0x195   : > { %990 = vmatpush.bf16.msrb.mxu2 %v1368_v22  ;;  %v1401_v22 = vld [vmem:[%s2118_s12 + $0xcc] sm:$0xf0] }
 0x196   : > { %1014 = vmatpush.bf16.msrb.mxu3 %v1464_v23  ;;  %1062 = vmatpush.bf16.msrb.mxu1 %v1468_v16  ;;  %v1324_v23 = vor.u32 %v1508_v12, %v1323_v11  ;;  %v1529_v16 = vld [vmem:[%s2118_s12 + $0xd0] sm:$0xf0]  ;;  %p1863_p11 = pneg %p1862_p7 }
 0x197   : > { %1038 = vmatpush.bf16.msrb.mxu0 %v1372_v35  ;;  %v1404_v35 = vor.u32 %v1527_v21, %v1401_v22  ;;  %v1408_v36 = vor.u32 %v1529_v16, %v1407_v25 }
 0x198   : > { %p1868_p2 = pnand %p1867_p1, %p1863_p11 }
 0x199   : > { %991 = vmatpush.bf16.msrb.mxu2 %v1356_v17 }
 0x19a   : > { %1015 = vmatpush.bf16.msrb.mxu3 %v1452_v38  ;;  %1063 = vmatpush.bf16.msrb.mxu1 %v1456_v41 }
 0x19b   : > { %1039 = vmatpush.bf16.msrb.mxu0 %v1360_v44 }
 0x19c   : > { %953 = vmatmul.bf16.gmra.mxu0 %v2357_v59 }
 0x19d   : > { %992 = vmatpush.bf16.msrb.mxu2 %v1344_v56  ;;  %977 = vmatmul.bf16.gmra.mxu1 %v1292_v62 }
 0x19e   : > { %1016 = vmatpush.bf16.msrb.mxu3 %v1440_v57  ;;  %1064 = vmatpush.bf16.msrb.mxu1 %v1444_v60 }
 0x19f   : > { %1040 = vmatpush.bf16.msrb.mxu0 %v1348_v63 }
 0x1a1   : > { %993 = vmatpush.bf16.msrb.mxu2 %v1332_v4 }
 0x1a2   : > { %1017 = vmatpush.bf16.msrb.mxu3 %v1428_v6  ;;  %1065 = vmatpush.bf16.msrb.mxu1 %v1432_v0 }
 0x1a3   : > { %1041 = vmatpush.bf16.msrb.mxu0 %v1336_v33 }
 0x1a5   : > { %994 = vmatpush.bf16.msrb.mxu2 %v1320_v13 }
 0x1a6   : > { %1018 = vmatpush.bf16.msrb.mxu3 %v1416_v14  ;;  %1066 = vmatpush.bf16.msrb.mxu1 %v1420_v18 }
 0x1a7   : > { %1042 = vmatpush.bf16.msrb.mxu0 %v1324_v23 }
 0x1a9   : > { %995 = vmatpush.bf16.msrb.mxu2 %v1308_v27 }
 0x1aa   : > { %1019 = vmatpush.bf16.msrb.mxu3 %v1404_v35  ;;  %1067 = vmatpush.bf16.msrb.mxu1 %v1408_v36 }
 0x1ab   : > { %1043 = vmatpush.bf16.msrb.mxu0 %v1312_v46 }
 0x1ac   : > { %996 = vmatmul.bf16.vlgmr.msrb.gmra.mxu2 %v2313_v29 }
 0x1ad   : > { %1020 = vmatmul.bf16.vlgmr.msrb.gmra.mxu3 %v2318_v5  ;;  %1068 = vmatmul.bf16.vlgmr.msrb.gmra.mxu1 %v2318_v5 }
 0x1ae   : > { %1044 = vmatmul.bf16.vlgmr.msrb.gmra.mxu0 %v2313_v29 }
 0x1bc   : > { %1001 = vmatmul.bf16.gmra.mxu2 %v2357_v59 }
 0x1bd   : > { %1025 = vmatmul.bf16.gmra.mxu3 %v1292_v62  ;;  %1073 = vmatmul.bf16.gmra.mxu1 %v1292_v62 }
 0x1be   : > { %1049 = vmatmul.bf16.gmra.mxu0 %v2357_v59 }
 0x1cc   : > { %1006 = vmatmul.bf16.gmra.mxu2 %v2322_v30 }
 0x1cd   : > { %1030 = vmatmul.bf16.gmra.mxu3 %v2326_v1  ;;  %1078 = vmatmul.bf16.gmra.mxu1 %v2326_v1  ;;  %v2404_v1 = vperm.slane %v646_v42, 0 }
 0x1ce   : > { %1054 = vmatmul.bf16.gmra.mxu0 %v2322_v30  ;;  %v2402_v30 = vperm.slane %v646_v42, 2 }
 0x209   : > { %v949_v47 = vpop.f32.mrf.mxu0 }
 0x20a   : > { %v973_v37 = vpop.f32.mrf.mxu1  ;;  %v950_v24 = vadd.f32 %v949_v47, %v2404_v1 }
 0x20c   : > { %v974_v59 = vadd.f32 %v973_v37, %v950_v24 }
 0x20f   : > { %v2393_v50 = vpop.f32.mrf.mxu2 }
 0x211   : > { %v951_v29 = vpop.f32.mrf.mxu0 }
 0x212   : > { %v975_v17 = vpop.f32.mrf.mxu1  ;;  %v2395_v51 = vpop.f32.mrf.mxu3  ;;  %v952_v63 = vadd.f32 %v951_v29, %v2404_v1 }
 0x214   : > { %v976_v6 = vadd.f32 %v975_v17, %v952_v63  ;;  %v960_v17 = vadd.f32 %v2393_v50, %v2404_v1 }
 0x217   : > { %v2398_v43 = vpop.f32.mrf.mxu2 }
 0x219   : > { %v954_v5 = vpop.f32.mrf.mxu0 }
 0x21a   : > { %v978_v38 = vpop.f32.mrf.mxu1  ;;  %v2400_v48 = vpop.f32.mrf.mxu3  ;;  %v955_v33 = vadd.f32 %v954_v5, %v2404_v1 }
 0x21c   : > { %v979_v14 = vadd.f32 %v978_v38, %v955_v33 }
 0x221   : > { %v956_v39 = vpop.f32.mrf.mxu0 }
 0x222   : > { %v980_v41 = vpop.f32.mrf.mxu1  ;;  %v957_v23 = vadd.f32 %v956_v39, %v2404_v1 }
 0x224   : > { %v981_v35 = vadd.f32 %v980_v41, %v957_v23 }
 0x22a   : > { %v1069_v45 = vpop.f32.mrf.mxu1 }
 0x22b   : > { %v1045_v44 = vpop.f32.mrf.mxu0 }
 0x22c   : > { %v1046_v49 = vadd.f32 %v1045_v44, %v2402_v30  ;;  %v984_v44 = vadd.f32 %v2395_v51, %v960_v17 }
 0x22e   : > { %v1070_v54 = vadd.f32 %v1069_v45, %v1046_v49 }
 0x22f   : > { %v997_v55 = vpop.f32.mrf.mxu2 }
 0x230   : > { %v1021_v56 = vpop.f32.mrf.mxu3  ;;  %v1085_v57 = vpack.c.bf16 %v1070_v54, %v1070_v54  ;;  %v998_v58 = vadd.f32 %v997_v55, %v2407_v52  ;;  %v962_v55 = vadd.f32 %v2398_v43, %v2404_v1 }
 0x232   : > { %1097 = vst [vmem:[%s2128_s1 + $0x8] sm:$0xf] %v1085_v57  ;;  %v1022_v60 = vadd.f32 %v1021_v56, %v998_v58  ;;  %v1071_v62 = vpop.f32.mrf.mxu1 }
 0x233   : > { %v1047_v61 = vpop.f32.mrf.mxu0 }
 0x234   : > { %v1084_v2 = vpack.c.bf16 %v1022_v60, %v974_v59  ;;  %v1048_v3 = vadd.f32 %v1047_v61, %v2402_v30  ;;  %v986_v59 = vadd.f32 %v2400_v48, %v962_v55 }
 0x236   : > { %1096 = vst [vmem:[%s2128_s1] sm:$0xff] %v1084_v2  ;;  %v1072_v28 = vadd.f32 %v1071_v62, %v1048_v3 }
 0x237   : > { %v999_v34 = vpop.f32.mrf.mxu2 }
 0x238   : > { %v1023_v40 = vpop.f32.mrf.mxu3  ;;  %v1087_v53 = vpack.c.bf16 %v1072_v28, %v1072_v28  ;;  %v1000_v4 = vadd.f32 %v999_v34, %v2407_v52 }
 0x23a   : > { %1099 = vst [vmem:[%s2128_s1 + $0x14] sm:$0xf] %v1087_v53  ;;  %v1024_v7 = vadd.f32 %v1023_v40, %v1000_v4  ;;  %v1074_v32 = vpop.f32.mrf.mxu1 }
 0x23b   : > { %v1050_v0 = vpop.f32.mrf.mxu0 }
 0x23c   : > { %v1086_v31 = vpack.c.bf16 %v1024_v7, %v976_v6  ;;  %v1051_v8 = vadd.f32 %v1050_v0, %v2402_v30 }
 0x23e   : > { %1098 = vst [vmem:[%s2128_s1 + $0xc] sm:$0xff] %v1086_v31  ;;  %v1075_v9 = vadd.f32 %v1074_v32, %v1051_v8 }
 0x23f   : > { %v1002_v10 = vpop.f32.mrf.mxu2 }
 0x240   : > { %v1026_v11 = vpop.f32.mrf.mxu3  ;;  %v1089_v12 = vpack.c.bf16 %v1075_v9, %v1075_v9  ;;  %v1003_v13 = vadd.f32 %v1002_v10, %v2407_v52 }
 0x242   : > { %1101 = vst [vmem:[%s2128_s1 + $0x20] sm:$0xf] %v1089_v12  ;;  %v1027_v15 = vadd.f32 %v1026_v11, %v1003_v13  ;;  %v1076_v22 = vpop.f32.mrf.mxu1 }
 0x243   : > { %v1052_v18 = vpop.f32.mrf.mxu0 }
 0x244   : > { %v1088_v19 = vpack.c.bf16 %v1027_v15, %v979_v14  ;;  %v1053_v21 = vadd.f32 %v1052_v18, %v2402_v30 }
 0x246   : > { %1100 = vst [vmem:[%s2128_s1 + $0x18] sm:$0xff] %v1088_v19  ;;  %v1077_v25 = vadd.f32 %v1076_v22, %v1053_v21 }
 0x247   : > { %v1004_v16 = vpop.f32.mrf.mxu2 }
 0x248   : > { %v1028_v20 = vpop.f32.mrf.mxu3  ;;  %v1091_v26 = vpack.c.bf16 %v1077_v25, %v1077_v25  ;;  %v1005_v27 = vadd.f32 %v1004_v16, %v2407_v52 }
 0x24a   : > { %1103 = vst [vmem:[%s2128_s1 + $0x2c] sm:$0xf] %v1091_v26  ;;  %v1029_v36 = vadd.f32 %v1028_v20, %v1005_v27  ;;  %v1079_v29 = vpop.f32.mrf.mxu1 }
 0x24b   : > { %v1055_v46 = vpop.f32.mrf.mxu0 }
 0x24c   : > { %v1090_v47 = vpack.c.bf16 %v1029_v36, %v981_v35  ;;  %v1056_v37 = vadd.f32 %v1055_v46, %v2402_v30 }
 0x24e   : > { %1102 = vst [vmem:[%s2128_s1 + $0x24] sm:$0xff] %v1090_v47  ;;  %v1080_v5 = vadd.f32 %v1079_v29, %v1056_v37 }
 0x24f   : > { %v1007_v38 = vpop.f32.mrf.mxu2 }
 0x250   : > { %v1031_v39 = vpop.f32.mrf.mxu3  ;;  %v1093_v42 = vpack.c.bf16 %v1080_v5, %v1080_v5  ;;  %v1008_v41 = vadd.f32 %v1007_v38, %v2407_v52 }
 0x252   : > { %1105 = vst [vmem:[%s2128_s1 + $0x38] sm:$0xf] %v1093_v42  ;;  %v1032_v49 = vadd.f32 %v1031_v39, %v1008_v41  ;;  %v1081_v50 = vpop.f32.mrf.mxu1 }
 0x253   : > { %v1057_v45 = vpop.f32.mrf.mxu0 }
 0x254   : > { %v1092_v24 = vpack.c.bf16 %v1032_v49, %v984_v44  ;;  %v1058_v54 = vadd.f32 %v1057_v45, %v2402_v30 }
 0x256   : > { %1104 = vst [vmem:[%s2128_s1 + $0x30] sm:$0xff] %v1092_v24  ;;  %v1082_v56 = vadd.f32 %v1081_v50, %v1058_v54 }
 0x257   : > { %v1009_v51 = vpop.f32.mrf.mxu2 }
 0x258   : > { %v1095_v57 = vpack.c.bf16 %v1082_v56, %v1082_v56  ;;  %v1010_v58 = vadd.f32 %v1009_v51, %v2407_v52  ;;  %v1033_v30 = vpop.f32.mrf.mxu3 }
 0x25a   : > { %1107 = vst [vmem:[%s2128_s1 + $0x44] sm:$0xf] %v1095_v57  ;;  %v1034_v60 = vadd.f32 %v1033_v30, %v1010_v58 }
 0x25c   : > { %v1094_v61 = vpack.c.bf16 %v1034_v60, %v986_v59 }
 0x25e   : > { %1106 = vst [vmem:[%s2128_s1 + $0x3c] sm:$0xff] %v1094_v61 }
 0x25f   : > { %1871 = shalt.err (!%p1868_p2)
}
 0x260   : > { %s1945_s7 = smov 192   ;;  %s1946_s0 = smov 384  }
 0x261   : > { %s1947_s3 = smov 12  }
 0x262   : > { %1589 = dma.vmem_to_hbm [thread:$0]  (%p2030_p8), %s1125_s21, 1152, %s1127_s10, %s1109_s18, %s1945_s7, %s1946_s0, %s1947_s3  }
 0x263 PF: > { %s2512_s23 = sld [smem:[#allocation17_spill]]  ;;  %p1609_p4 = pnand %p1270_p13, %p2034_p9 }
 0x264   : > { %s2514_s12 = sld [smem:[#allocation18_spill]] }
 0x265   : > { %p1610_p6 = pneg %p1609_p4 }
 0x269   : > { %s1141_s13 = sand.u32 1, %s2512_s23  }
 0x26a   : > { %s1142_s6 = scalar_lea.sflag [#allocation5], %s1141_s13 }
 0x26b   : > { %1909 = dma.done.wait (%p1610_p6), %s1142_s6, 1152  }
 0x26c   : > { %1911 = vsyncadd (%p1610_p6), %s1142_s6, 4294966144  ;;  %s23_s23 = sadd.s32 1, %s2514_s12   ;;  %s2515_s30 = sld [smem:[#allocation21_spill]] }
 0x26d   : > { %p20_p10 = scmp.ge.s32.totalorder %s23_s23, 4   ;;  %s2516_s29 = sld [smem:[#allocation20_spill]] }
 0x26e   : > { %s2517_s18 = smov %s1918_s19  ;;  %s2518_s19 = smov %s1922_s20 }
 0x26f   : > { %s2520_s21 = smov %s1930_s22  ;;  %22 = sbr.rel (!%p20_p10) target bundleno = 12 (0xc), region = 114 }
 0x272   : > { %s2519_s20 = smov %s2515_s30 }
 0x273   : > { %s2521_s22 = smov %s2516_s29 }
 0x274   :  { %1148 = vsyncpa [#allocation4], 1 }
 0x275   :  { %1150 = vsyncpa [#allocation4 + $0x1], 1 }
 0x276   :  { %1151 = vsyncpa [#allocation7], 1 }
 0x277   :  { %1152 = vsyncpa [#allocation10], 1 }
 0x278   :  { %1154 = vsyncpa [#allocation10 + $0x1], 1 }
 0x279   :  { %1155 = vsyncpa [#allocation5], 1 }
 0x27a   :  { %1157 = vsyncpa [#allocation5 + $0x1], 1 }

</bundles_post_ra>
